<compile_context>
chip_gen: v7x
topology: tpu7x:2x2x1
jax: 0.10.0
libtpu: 0.0.40
codegen_flags: <defaults>
</compile_context>

<pallas_src>
import functools

import jax
import jax.numpy as jnp
from jax.experimental import pallas as pl
from jax.experimental.pallas import tpu as pltpu


def _cdiv(a, b):
    return -(-a // b)


def _iou_partial_kernel(x_ref, t_ref, inter_ref, sum_ref, inter_acc, sum_acc,
                        *, k_per_split, total_k, rem):
    s = pl.program_id(0)
    k = pl.program_id(2)

    @pl.when(k == 0)
    def _():
        inter_acc[...] = jnp.zeros_like(inter_acc)
        sum_acc[...] = jnp.zeros_like(sum_acc)

    # Upcast in VMEM; inputs stay narrow (bf16 / int8) in HBM.
    x = x_ref[...].astype(jnp.float32)
    t = t_ref[...].astype(jnp.float32)

    def _accum(xv, tv):
        # union = sum(x + t) - intersection -> only two lane reductions / step.
        inter_acc[...] += jnp.sum(xv * tv, axis=1, keepdims=True)
        sum_acc[...] += jnp.sum(xv + tv, axis=1, keepdims=True)

    if rem == 0:
        _accum(x, t)
    else:
        g = s * k_per_split + k          # global spatial step index

        @pl.when(g != total_k - 1)
        def _():
            _accum(x, t)

        @pl.when(g == total_k - 1)
        def _():
            # Last spatial block is partial: mask undefined lanes. Use where
            # (select), not multiply, in case the tail bytes decode to NaN/Inf.
            lane = jax.lax.broadcasted_iota(jnp.int32, x.shape, 1)
            valid = lane < rem
            _accum(jnp.where(valid, x, 0.0), jnp.where(valid, t, 0.0))

    @pl.when(k == k_per_split - 1)
    def _():
        inter_ref[...] = inter_acc[...][None]
        sum_ref[...] = sum_acc[...][None]


def _default_step_bytes():
    """Per-grid-step input-tile byte budget, derived from this chip's VMEM."""
    step = 8 * 1024 * 1024
    try:
        cap = pltpu.get_tpu_info().vmem_capacity_bytes
        # Double-buffered inputs (2 x step bytes live) stay under ~1/4 of VMEM
        # (v7x only has 64 MiB physical; v5e/v6e have 128 MiB).
        step = min(step, max(512 * 1024, cap // 8))
    except Exception:
        pass
    return step


def iou_loss(x, target, *, max_step_bytes=None):
    """IoU loss for NCHW `x` vs `target`. Returns a scalar float32."""
    assert x.shape == target.shape and x.ndim == 4
    N, C, H, W = x.shape
    rows, spatial = N * C, H * W

    if max_step_bytes is None:
        max_step_bytes = _default_step_bytes()

    if target.dtype == jnp.bool_:
        # TODO(synk): accept the stored 1-byte mask via a no-copy pred->s8
        # reinterpret instead of this astype copy once XLA exposes one.
        target = target.astype(jnp.int8)

    xf = x.reshape(rows, spatial)
    tf = target.reshape(rows, spatial)
    bytes_per_col = xf.dtype.itemsize + tf.dtype.itemsize

    # ---- row (sublane) tiling: rows = N*C is small for this loss. -----------
    if rows <= 1024:
        row_block = rows                 # single block == full dim (no 8-align, no pad)
    else:
        row_block = 256                  # multiple of every dtype's sublane tile
    num_r = _cdiv(rows, row_block)

    # ---- spatial (lane) tiling under the per-step byte budget. --------------
    max_lanes = max(128, (max_step_bytes // (row_block * bytes_per_col)) // 128 * 128)
    if spatial <= max_lanes:
        s_tile = spatial                 # single block == full dim (no 128-align, no pad)
        total_k = 1
    else:
        s_tile = max_lanes
        total_k = _cdiv(spatial, s_tile)

    # ---- spatial split so a "parallel" axis has >=2 blocks (v7x: 2 TCs). ----
    num_s, k_per_split = 1, total_k
    if num_r == 1 and total_k >= 2:
        t_try = s_tile
        while t_try > 128 and _cdiv(spatial, t_try) % 2 != 0:
            t_try -= 128                 # nudge tile so the step count is even (no waste)
        if _cdiv(spatial, t_try) % 2 == 0:
            s_tile = t_try
            total_k = _cdiv(spatial, s_tile)
            num_s, k_per_split = 2, total_k // 2

    rem = spatial % s_tile               # valid lanes in the last (partial) block

    grid = (num_s, num_r, k_per_split)
    step_bytes = row_block * s_tile * bytes_per_col
    # 2 inputs x 2 pipeline buffers + outputs/scratch/compiler headroom.
    vmem_limit = int(max(16 * 1024 * 1024, 2 * step_bytes + 6 * 1024 * 1024))

    kernel = functools.partial(
        _iou_partial_kernel,
        k_per_split=k_per_split, total_k=total_k, rem=rem)

    out_shape = jax.ShapeDtypeStruct((num_s, rows, 1), jnp.float32)

    inter_parts, sum_parts = pl.pallas_call(
        kernel,
        out_shape=(out_shape, out_shape),
        grid_spec=pltpu.PrefetchScalarGridSpec(
            num_scalar_prefetch=0,
            grid=grid,
            in_specs=[
                pl.BlockSpec((row_block, s_tile),
                             lambda s, r, k: (r, s * k_per_split + k)),
                pl.BlockSpec((row_block, s_tile),
                             lambda s, r, k: (r, s * k_per_split + k)),
            ],
            out_specs=(
                pl.BlockSpec((1, row_block, 1), lambda s, r, k: (s, r, 0)),
                pl.BlockSpec((1, row_block, 1), lambda s, r, k: (s, r, 0)),
            ),
            scratch_shapes=[
                pltpu.VMEM((row_block, 1), jnp.float32),  # intersection acc
                pltpu.VMEM((row_block, 1), jnp.float32),  # sum(x)+sum(t) acc
            ],
        ),
        compiler_params=pltpu.CompilerParams(
            dimension_semantics=("parallel", "parallel", "arbitrary"),
            vmem_limit_bytes=vmem_limit,
        ),
        cost_estimate=pl.CostEstimate(
            flops=4 * rows * spatial,
            transcendentals=0,
            bytes_accessed=rows * spatial * bytes_per_col + 8 * num_s * rows,
        ),
    )(xf, tf)

    # Tiny per-row combine + IoU + mean epilogue in plain JAX.
    inter = jnp.sum(inter_parts[:, :, 0], axis=0)        # (rows,)
    total = jnp.sum(sum_parts[:, :, 0], axis=0)           # sum(x)+sum(t) per row
    union = total - inter
    iou = (inter + 1e-6) / (union + 1e-6)
    return 1.0 - jnp.mean(iou)


def iou_loss_ref(x, target):
    x = x.astype(jnp.float32)
    t = target.astype(jnp.float32)
    intersection = (x * t).sum((2, 3))
    union = x.sum((2, 3)) + t.sum((2, 3)) - intersection
    iou = (intersection + 1e-6) / (union + 1e-6)
    return 1.0 - iou.mean()


if __name__ == "__main__":
    key = jax.random.PRNGKey(0)
    k1, k2, k3, k4, k5, k6 = jax.random.split(key, 6)

    # Case 1: small aligned shapes, f32 preds / f32 targets, single-tile grid.
    x1 = jax.random.uniform(k1, (2, 4, 16, 16), dtype=jnp.float32)
    t1 = (jax.random.uniform(k2, (2, 4, 16, 16)) > 0.5).astype(jnp.float32)
    out1 = jax.block_until_ready(iou_loss(x1, t1))
    ref1 = jax.block_until_ready(iou_loss_ref(x1, t1))
    assert jnp.allclose(out1, ref1, atol=1e-5, rtol=1e-5), (out1, ref1)

    # Case 2: unaligned rows (6) and spatial (1296), int8 binary-mask target,
    # tiny per-step budget -> multi-step reduction, 2-way spatial split, and an
    # in-kernel lane mask on the partial last block (no wrapper-side padding).
    x2 = jax.random.uniform(k3, (2, 3, 36, 36), dtype=jnp.float32)
    t2 = (jax.random.uniform(k4, (2, 3, 36, 36)) > 0.5).astype(jnp.int8)
    out2 = jax.block_until_ready(iou_loss(x2, t2, max_step_bytes=8 * 1024))
    ref2 = jax.block_until_ready(iou_loss_ref(x2, t2))
    assert jnp.allclose(out2, ref2, atol=1e-5, rtol=1e-5), (out2, ref2)

    # Case 3: larger feature map with default (generation-aware) tile budget.
    x3 = jax.random.uniform(k5, (2, 4, 128, 128), dtype=jnp.float32)
    t3 = (jax.random.uniform(k6, (2, 4, 128, 128)) > 0.5).astype(jnp.float32)
    out3 = jax.block_until_ready(iou_loss(x3, t3))
    ref3 = jax.block_until_ready(iou_loss_ref(x3, t3))
    assert jnp.allclose(out3, ref3, atol=1e-5, rtol=1e-5), (out3, ref3)

    print("KERNEL_OK")
</pallas_src>

<mosaic_0001>
module attributes {stable_mosaic.version = 11 : i64} {
  func.func @_iou_partial_kernel(%arg0: i32, %arg1: i32, %arg2: i32, %arg3: memref<8x256xf32, #tpu.memory_space<vmem>>, %arg4: memref<8x256xf32, #tpu.memory_space<vmem>>, %arg5: memref<1x8x1xf32, #tpu.memory_space<vmem>>, %arg6: memref<1x8x1xf32, #tpu.memory_space<vmem>>, %arg7: memref<8x1xf32, #tpu.memory_space<vmem>>, %arg8: memref<8x1xf32, #tpu.memory_space<vmem>>) attributes {dimension_semantics = [#tpu.dimension_semantics<parallel>, #tpu.dimension_semantics<parallel>, #tpu.dimension_semantics<arbitrary>], iteration_bounds = array<i64: 1, 1, 1>, scalar_prefetch = 0 : i64, scratch_operands = 2 : i64, tpu.core_type = #tpu.core_type<tc>, window_params = [{transform_indices = @transform_0, window_bounds = array<i64: 8, 256>}, {transform_indices = @transform_1, window_bounds = array<i64: 8, 256>}, {transform_indices = @transform_2, window_bounds = array<i64: 1, 8, 1>}, {transform_indices = @transform_3, window_bounds = array<i64: 1, 8, 1>}]} {
    %c0_i32 = arith.constant 0 : i32
    %0 = arith.cmpi eq, %arg2, %c0_i32 : i32
    %1 = arith.extui %0 : i1 to i32
    %c0_i32_0 = arith.constant 0 : i32
    %2 = arith.cmpi ne, %1, %c0_i32_0 : i32
    scf.if %2 {
      %cst_15 = arith.constant 0.000000e+00 : f32
      %20 = vector.broadcast %cst_15 : f32 to vector<8x1xf32>
      %c0_16 = arith.constant 0 : index
      %c0_17 = arith.constant 0 : index
      %21 = vector.load %arg7[%c0_16, %c0_17] : memref<8x1xf32, #tpu.memory_space<vmem>>, vector<8x1xf32>
      tpu.vector_store %arg7[%c0_16, %c0_17], %20 {strides = array<i32>} : memref<8x1xf32, #tpu.memory_space<vmem>>, vector<8x1xf32>,
      %cst_18 = arith.constant 0.000000e+00 : f32
      %22 = vector.broadcast %cst_18 : f32 to vector<8x1xf32>
      %c0_19 = arith.constant 0 : index
      %c0_20 = arith.constant 0 : index
      %23 = vector.load %arg8[%c0_19, %c0_20] : memref<8x1xf32, #tpu.memory_space<vmem>>, vector<8x1xf32>
      tpu.vector_store %arg8[%c0_19, %c0_20], %22 {strides = array<i32>} : memref<8x1xf32, #tpu.memory_space<vmem>>, vector<8x1xf32>,
    } else {
    }
    %c0 = arith.constant 0 : index
    %c0_1 = arith.constant 0 : index
    %3 = vector.load %arg3[%c0, %c0_1] : memref<8x256xf32, #tpu.memory_space<vmem>>, vector<8x256xf32>
    %c0_2 = arith.constant 0 : index
    %c0_3 = arith.constant 0 : index
    %4 = vector.load %arg4[%c0_2, %c0_3] : memref<8x256xf32, #tpu.memory_space<vmem>>, vector<8x256xf32>
    %c0_4 = arith.constant 0 : index
    %c0_5 = arith.constant 0 : index
    %5 = vector.load %arg7[%c0_4, %c0_5] : memref<8x1xf32, #tpu.memory_space<vmem>>, vector<8x1xf32>
    %6 = arith.mulf %3, %4 : vector<8x256xf32>
    %cst = arith.constant dense<0.000000e+00> : vector<8xf32>
    %7 = vector.multi_reduction <add>, %6, %cst [1] : vector<8x256xf32> to vector<8xf32>
    %8 = vector.shape_cast %7 : vector<8xf32> to vector<8x1xf32>
    %9 = arith.addf %5, %8 : vector<8x1xf32>
    %c0_6 = arith.constant 0 : index
    %c0_7 = arith.constant 0 : index
    %10 = vector.load %arg7[%c0_6, %c0_7] : memref<8x1xf32, #tpu.memory_space<vmem>>, vector<8x1xf32>
    tpu.vector_store %arg7[%c0_6, %c0_7], %9 {strides = array<i32>} : memref<8x1xf32, #tpu.memory_space<vmem>>, vector<8x1xf32>,
    %c0_8 = arith.constant 0 : index
    %c0_9 = arith.constant 0 : index
    %11 = vector.load %arg8[%c0_8, %c0_9] : memref<8x1xf32, #tpu.memory_space<vmem>>, vector<8x1xf32>
    %12 = arith.addf %3, %4 : vector<8x256xf32>
    %cst_10 = arith.constant dense<0.000000e+00> : vector<8xf32>
    %13 = vector.multi_reduction <add>, %12, %cst_10 [1] : vector<8x256xf32> to vector<8xf32>
    %14 = vector.shape_cast %13 : vector<8xf32> to vector<8x1xf32>
    %15 = arith.addf %11, %14 : vector<8x1xf32>
    %c0_11 = arith.constant 0 : index
    %c0_12 = arith.constant 0 : index
    %16 = vector.load %arg8[%c0_11, %c0_12] : memref<8x1xf32, #tpu.memory_space<vmem>>, vector<8x1xf32>
    tpu.vector_store %arg8[%c0_11, %c0_12], %15 {strides = array<i32>} : memref<8x1xf32, #tpu.memory_space<vmem>>, vector<8x1xf32>,
    %c0_i32_13 = arith.constant 0 : i32
    %17 = arith.cmpi eq, %arg2, %c0_i32_13 : i32
    %18 = arith.extui %17 : i1 to i32
    %c0_i32_14 = arith.constant 0 : i32
    %19 = arith.cmpi ne, %18, %c0_i32_14 : i32
    scf.if %19 {
      %c0_15 = arith.constant 0 : index
      %c0_16 = arith.constant 0 : index
      %20 = vector.load %arg7[%c0_15, %c0_16] : memref<8x1xf32, #tpu.memory_space<vmem>>, vector<8x1xf32>
      %21 = vector.shape_cast %20 : vector<8x1xf32> to vector<1x8x1xf32>
      %c0_17 = arith.constant 0 : index
      %c0_18 = arith.constant 0 : index
      %c0_19 = arith.constant 0 : index
      %22 = vector.load %arg5[%c0_17, %c0_18, %c0_19] : memref<1x8x1xf32, #tpu.memory_space<vmem>>, vector<1x8x1xf32>
      tpu.vector_store %arg5[%c0_17, %c0_18, %c0_19], %21 {strides = array<i32>} : memref<1x8x1xf32, #tpu.memory_space<vmem>>, vector<1x8x1xf32>,
      %c0_20 = arith.constant 0 : index
      %c0_21 = arith.constant 0 : index
      %23 = vector.load %arg8[%c0_20, %c0_21] : memref<8x1xf32, #tpu.memory_space<vmem>>, vector<8x1xf32>
      %24 = vector.shape_cast %23 : vector<8x1xf32> to vector<1x8x1xf32>
      %c0_22 = arith.constant 0 : index
      %c0_23 = arith.constant 0 : index
      %c0_24 = arith.constant 0 : index
      %25 = vector.load %arg6[%c0_22, %c0_23, %c0_24] : memref<1x8x1xf32, #tpu.memory_space<vmem>>, vector<1x8x1xf32>
      tpu.vector_store %arg6[%c0_22, %c0_23, %c0_24], %24 {strides = array<i32>} : memref<1x8x1xf32, #tpu.memory_space<vmem>>, vector<1x8x1xf32>,
    } else {
    }
    return
  }
  func.func @transform_0(%arg0: i32, %arg1: i32, %arg2: i32) -> (i32, i32) {
    %c1_i32 = arith.constant 1 : i32
    %0 = arith.muli %arg0, %c1_i32 : i32
    %1 = arith.addi %0, %arg2 : i32
    %c0_i32 = arith.constant 0 : i32
    return %arg1, %1 : i32, i32
  }
  func.func @transform_1(%arg0: i32, %arg1: i32, %arg2: i32) -> (i32, i32) {
    %c1_i32 = arith.constant 1 : i32
    %0 = arith.muli %arg0, %c1_i32 : i32
    %1 = arith.addi %0, %arg2 : i32
    %c0_i32 = arith.constant 0 : i32
    return %arg1, %1 : i32, i32
  }
  func.func @transform_2(%arg0: i32, %arg1: i32, %arg2: i32) -> (i32, i32, i32) {
    %c0_i32 = arith.constant 0 : i32
    %c0_i32_0 = arith.constant 0 : i32
    return %arg0, %arg1, %c0_i32 : i32, i32, i32
  }
  func.func @transform_3(%arg0: i32, %arg1: i32, %arg2: i32) -> (i32, i32, i32) {
    %c0_i32 = arith.constant 0 : i32
    %c0_i32_0 = arith.constant 0 : i32
    return %arg0, %arg1, %c0_i32 : i32, i32, i32
  }
}

</mosaic_0001>

<bundles_post_ra>
// kernel: tpu_custom_call.1
= control target key start
LH: loop header
LB: loop body
LE: loop exit
PB: predicated region body
PF: predicated region fallthrough
CT: control target
= control target key end

     0   :  { %9 = vsyncpa [#allocation5], 0  ;;  %s204_s0 = inlined_call_operand.hbm [shape: f32[8,256], index: 0, kind: input, shape index: {}]   ;;  %s205_s1 = inlined_call_operand.hbm [shape: f32[8,256], index: 1, kind: input, shape index: {}]   ;;  %s206_s2 = inlined_call_operand.vmem [shape: f32[1,8,1], index: 2, kind: output, shape index: {0}]   ;;  %s207_s3 = inlined_call_operand.vmem [shape: f32[1,8,1], index: 3, kind: output, shape index: {1}]  }
   0x1   :  { %10 = vsyncpa [#allocation7], 0  ;;  %s145_s12 = smov [#allocation4]   ;;  %s146_s14 = smov [#allocation6]  }
   0x2   :  { %s21_s13 = sshll.u32 %s145_s12, 4  ;;  %s35_s15 = sshll.u32 %s146_s14, 4  ;;  %s22_s13 = int_to_ptr.vmem [resolvable:$true] %s21_s13  ;;  %s36_s15 = int_to_ptr.vmem [resolvable:$true] %s35_s15 }
   0x3   :  { %s97_s18 = scalar_lea.hbm %s204_s0, 256 }
   0x4   :  { %p98_p0 = scmp.ne.s32.totalorder %s204_s0, %s97_s18  ;;  %p101_p1 = scmp.lt.u32.totalorder %s97_s18, %s204_s0 }
   0x6   :  { %p103_p2 = pnand %p101_p1, %p98_p0 }
   0x8   :  { %106 = shalt.err (!%p103_p2)
}
   0x9   :  { %s107_s23 = scalar_lea.vmem %s22_s13, 256  ;;  %p112_p4 = scmp.lt.s32.totalorder %s22_s13, %s22_s13 }
   0xa   :  { %p108_p3 = scmp.ne.s32.totalorder %s22_s13, %s107_s23  ;;  %p113_p5 = scmp.lt.s32.totalorder %s107_s23, %s107_s23 }
   0xc   :  { %p114_p6 = por %p113_p5, %p112_p4 }
   0xe   :  { %p115_p7 = pnand %p114_p6, %p108_p3 }
  0x10   :  { %118 = shalt.err (!%p115_p7)
}
  0x11   :  { %24 = dma.hbm_to_vmem [thread:$0]  %s204_s0, 256, %s22_s13, [#allocation5]  }
  0x12   :  { %s119_s28 = scalar_lea.hbm %s205_s1, 256 }
  0x13   :  { %p120_p8 = scmp.ne.s32.totalorder %s205_s1, %s119_s28  ;;  %p123_p9 = scmp.lt.u32.totalorder %s119_s28, %s205_s1 }
  0x15   :  { %p125_p10 = pnand %p123_p9, %p120_p8 }
  0x17   :  { %128 = shalt.err (!%p125_p10)
}
  0x18   :  { %s129_s6 = scalar_lea.vmem %s36_s15, 256  ;;  %p134_p12 = scmp.lt.s32.totalorder %s36_s15, %s36_s15 }
  0x19   :  { %p130_p11 = scmp.ne.s32.totalorder %s36_s15, %s129_s6  ;;  %p135_p13 = scmp.lt.s32.totalorder %s129_s6, %s129_s6 }
  0x1b   :  { %p136_p0 = por %p135_p13, %p134_p12 }
  0x1d   :  { %p137_p1 = pnand %p136_p0, %p130_p11 }
  0x1f   :  { %140 = shalt.err (!%p137_p1)
}
  0x20   :  { %38 = dma.hbm_to_vmem [thread:$0]  %s205_s1, 256, %s36_s15, [#allocation7]  }
  0x21   :  { %141 = dma.done.wait [#allocation5], 256  }
  0x22   :  { %142 = vsyncadd [#allocation5], 4294967040 }
  0x23   :  { %143 = dma.done.wait [#allocation7], 256  }
  0x24   :  { %144 = vsyncadd [#allocation7], 4294967040  ;;  %vm53_vm0 = vcmask 7168   ;;  %v147_v0 = vmov 0.0   ;;  %v56_v1 = vld [vmem:[#allocation4] sm:$0xff]  ;;  %v57_v2 = vld [vmem:[#allocation4 + $0x8] sm:$0xff] }
  0x25   :  { %54 = vst.msk [vmem:[#allocation2] sm:$0xff] %vm53_vm0, %v147_v0  ;;  %55 = vst.msk [vmem:[#allocation3] sm:$0xff] %vm53_vm0, %v147_v0  ;;  %v58_v3 = vld [vmem:[#allocation6] sm:$0xff]  ;;  %v59_v4 = vld [vmem:[#allocation6 + $0x8] sm:$0xff] }
  0x26   :  { %v61_v5 = vmul.f32 %v58_v3, %v56_v1  ;;  %v62_v6 = vmul.f32 %v59_v4, %v57_v2  ;;  %v70_v7 = vadd.f32 %v58_v3, %v56_v1  ;;  %v71_v8 = vadd.f32 %v59_v4, %v57_v2 }
  0x28   :  { %v63_v9 = vadd.f32 %v62_v6, %v61_v5  ;;  %v72_v10 = vadd.f32 %v71_v8, %v70_v7 }
  0x2a   :  { %64 = vadd.xlane.f32.xlu0 %v63_v9 }
  0x2c   :  { %v60_v11 = vld [vmem:[#allocation2] sm:$0xff]  ;;  %v69_v14 = vld [vmem:[#allocation3] sm:$0xff] }
  0x2e   :  { %73 = vadd.xlane.f32.xlu0 %v72_v10 }
  0xb7   :  { %v65_v12 = vpop.xlane.xlu0 %64 }
  0xb8   :  { %v66_v13 = vadd.f32 %v65_v12, %v60_v11 }
  0xba   :  { %68 = vst.msk [vmem:[#allocation2] sm:$0xff] %vm53_vm0, %v66_v13 }
  0xbb   :  { %v74_v15 = vpop.xlane.xlu0 %73 }
  0xbc   :  { %v75_v16 = vadd.f32 %v74_v15, %v69_v14 }
  0xbe   :  { %76 = vst.msk [vmem:[#allocation3] sm:$0xff] %vm53_vm0, %v75_v16 }
  0xc1   :  { %v80_v17 = vld [vmem:[#allocation2] sm:$0xff] }
  0xc2   :  { %81 = vst.msk [vmem:[%s206_s2] sm:$0xff] %vm53_vm0, %v80_v17 }
  0xc5   :  { %v82_v18 = vld [vmem:[#allocation3] sm:$0xff] }
  0xc6   :  { %83 = vst.msk [vmem:[%s207_s3] sm:$0xff] %vm53_vm0, %v82_v18 }
  0xc7   :  { %92 = vsyncpa [#allocation5], 1 }
  0xc8   :  { %93 = vsyncpa [#allocation7], 1 }

</bundles_post_ra>
